<compile_context>
chip_gen: v7x
topology: tpu7x:2x2x1
jax: 0.10.0
libtpu: 0.0.40
codegen_flags: <defaults>
</compile_context>

<pallas_src>
import jax
import jax.numpy as jnp
from jax.experimental import pallas as pl
from jax.experimental.pallas import tpu as pltpu

BN_EPS = 1e-5
_LANE = 128
_SUBLANE = 8


def _round_up(x, m):
    return (x + m - 1) // m * m


def _layer_plan(input_size, hidden_size):
    """Replicates FusionMLP.__init__ layer sizing: (fan_in, fan_out, has_bn)."""
    plan = [(input_size, hidden_size, False)]
    cur = hidden_size
    while cur > 8:
        nxt = max(8, cur // 2)
        plan.append((cur, nxt, True))
        cur = nxt
    plan.append((cur, 1, False))
    return plan


def init_params(key, input_size, hidden_size):
    """PyTorch-style Linear init; gamma/beta randomized to exercise the BN affine path."""
    plan = _layer_plan(input_size, hidden_size)
    params = []
    for (fi, fo, has_bn) in plan:
        key, kw, kb, kg, ke = jax.random.split(key, 5)
        bound = 1.0 / float(fi) ** 0.5
        layer = {
            "w": jax.random.uniform(kw, (fo, fi), jnp.float32, -bound, bound),
            "b": jax.random.uniform(kb, (fo,), jnp.float32, -bound, bound),
        }
        if has_bn:
            layer["gamma"] = jax.random.uniform(kg, (fo,), jnp.float32, 0.5, 1.5)
            layer["beta"] = jax.random.uniform(ke, (fo,), jnp.float32, -0.5, 0.5)
        params.append(layer)
    return params, plan


def pack_params(params, plan):
    """Packs all parameters into two HBM slabs.

    w_slab: (R, lane_w) f32.  Layer L occupies rows [row0, row0+fo) (row0 8-aligned),
        columns [0, fin); non-BN layers keep their bias in column fin.  BN-block
        linear biases are dropped (cancelled exactly by training-mode BN).
    bn_slab: (max_F, 2*nb) f32 with gamma_i in column 2i, beta_i in column 2i+1.
    meta: static ((row0, fo, fin, kind, bn_idx), ...), kind in {"relu","bn","out"}.
    """
    n_layers = len(plan)
    max_in = max(fi + (0 if hb else 1) for (fi, _, hb) in plan)
    lane_w = _round_up(max_in, _LANE)

    blocks, meta = [], []
    row, bn_idx = 0, 0
    for li, (layer, (fi, fo, has_bn)) in enumerate(zip(params, plan)):
        if has_bn:
            wb = layer["w"]                                   # bias cancelled by batch-stat BN
            kind, bi = "bn", bn_idx
            bn_idx += 1
        else:
            wb = jnp.concatenate([layer["w"], layer["b"][:, None]], axis=1)
            kind, bi = ("out" if li == n_layers - 1 else "relu"), -1
        rpad = _round_up(fo, _SUBLANE)
        blk = jnp.zeros((rpad, lane_w), jnp.float32).at[:fo, : wb.shape[1]].set(wb)
        blocks.append(blk)
        meta.append((row, fo, fi, kind, bi))
        row += rpad
    w_slab = jnp.concatenate(blocks, axis=0)

    bn_sizes = [fo for (_, fo, hb) in plan if hb]
    num_bn = len(bn_sizes)
    if num_bn:
        max_f = _round_up(max(bn_sizes), _SUBLANE)
        bn_slab = jnp.zeros((max_f, 2 * num_bn), jnp.float32)
        bi = 0
        for layer, (_, fo, hb) in zip(params, plan):
            if hb:
                bn_slab = bn_slab.at[:fo, 2 * bi].set(layer["gamma"])
                bn_slab = bn_slab.at[:fo, 2 * bi + 1].set(layer["beta"])
                bi += 1
    else:
        bn_slab = None
    return w_slab, bn_slab, tuple(meta), num_bn


def _make_kernel(meta, real_b, b_pad, num_bn):
    """Kernel: all activations feature-major (features on sublanes, batch on lanes)."""

    def kernel(*refs):
        if num_bn:
            x_ref, w_ref, bn_ref, o_ref = refs
            bn = bn_ref[...]                       # tiny (max_F, 2*nb), loaded once
        else:
            x_ref, w_ref, o_ref = refs
            bn = None

        # Transpose x once on the XLU (instead of a separate HBM pass in the wrapper).
        h = x_ref[...].T                           # (F_in, B_pad), batch on lanes

        # Masked ones-column: batch (lane) reduction rides the MXU and excludes
        # the padded lanes from the BatchNorm statistics.
        lane_ids = jax.lax.broadcasted_iota(jnp.int32, (b_pad, 1), 0)
        mask_col = (lane_ids < real_b).astype(jnp.float32)     # (B_pad, 1)
        inv_b = jnp.float32(1.0 / real_b)

        for (row0, fo, fin, kind, bi) in meta:
            # bf16 note: on v6e/v7x cast `w`/`h` to bf16 here, keep f32 accumulation.
            w = w_ref[row0:row0 + fo, :fin]
            z = jnp.dot(w, h, preferred_element_type=jnp.float32)   # (fo, B_pad)
            if kind == "bn":
                # One fused MXU push for per-feature sum and sum-of-squares.
                zz = jnp.concatenate([z, z * z], axis=0)             # (2*fo, B_pad)
                stats = jnp.dot(zz, mask_col, preferred_element_type=jnp.float32)
                mu = stats[:fo] * inv_b                              # (fo, 1)
                var = jnp.maximum(stats[fo:] * inv_b - mu * mu, 0.0)  # clamp one-pass var
                gb = bn[:fo, 2 * bi:2 * bi + 2]                      # (fo, 2)
                scale = gb[:, 0:1] * jax.lax.rsqrt(var + BN_EPS)
                shift = gb[:, 1:2] - mu * scale
                h = jnp.maximum(z * scale + shift, 0.0)
            else:
                # Non-BN layers keep their bias (packed in column `fin` of the slab).
                z = z + w_ref[row0:row0 + fo, fin:fin + 1]
                if kind == "relu":
                    h = jnp.maximum(z, 0.0)
                else:                                # final Linear(.,1): lane-dense store
                    o_ref[...] = z

    return kernel


def _vmem_budget_bytes():
    cap = None
    try:
        cap = int(getattr(pltpu.get_tpu_info(), "vmem_capacity_bytes", 0)) or None
    except Exception:
        cap = None
    if not cap:
        cap = 64 * 1024 * 1024                      # conservative fallback (v7x-sized part)
    # ~3/4 of physical, clamped: headroom for compiler-internal scratch / buffers.
    return max(32 * 1024 * 1024, min(3 * cap // 4, 100 * 1024 * 1024))


def _padded_vmem_bytes(shape, itemsize=4):
    r, c = (shape if len(shape) == 2 else (1, shape[-1]))
    return _round_up(max(r, 1), _SUBLANE) * _round_up(max(c, 1), _LANE) * itemsize


def fusion_mlp_pallas(x, w_slab, bn_slab, meta, num_bn):
    """x: (B, F_in) -> (B, 1), matching FusionMLP.forward (training-mode BN stats)."""
    B, f_in = x.shape
    b_pad = _round_up(max(B, 1), _LANE)
    if b_pad != B:
        # Ragged batch handled in the wrapper (zero rows); padded lanes are excluded
        # from the BN statistics in the kernel and sliced off below.
        x = jnp.pad(x, ((0, b_pad - B), (0, 0)))

    vmem_limit = _vmem_budget_bytes()

    # Whole-batch residency is a designed constraint: assert the (8,128)-padded VMEM
    # footprint instead of silently hitting the cliff.
    feat_sum = f_in + sum(fo for (_, fo, _, _, _) in meta)
    act_bytes = 8 * 4 * b_pad * feat_sum             # activations + temporaries (generous)
    total = (
        _padded_vmem_bytes(x.shape)
        + _padded_vmem_bytes(w_slab.shape)
        + (_padded_vmem_bytes(bn_slab.shape) if num_bn else 0)
        + _padded_vmem_bytes((1, b_pad))
        + act_bytes
        + (2 << 20)                                   # compiler-internal scratch margin
    )
    assert total <= vmem_limit, (
        f"Batch too large for the whole-batch-resident kernel ({total} B > "
        f"{vmem_limit} B); a batch-tiled grid with a cross-tile BN stat reduction "
        "is required."
    )

    kernel = _make_kernel(meta, B, b_pad, num_bn)
    vmem = pl.BlockSpec(memory_space=pltpu.MemorySpace.VMEM)
    inputs = (x, w_slab) + ((bn_slab,) if num_bn else ())

    out_row = pl.pallas_call(
        kernel,
        out_shape=jax.ShapeDtypeStruct((1, b_pad), jnp.float32),
        in_specs=[vmem] * len(inputs),
        out_specs=vmem,
        compiler_params=pltpu.CompilerParams(vmem_limit_bytes=vmem_limit),
    )(*inputs)
    return out_row[:, :B].T                           # (B, 1) — layout plumbing only


def fusion_mlp_ref(x, params, plan):
    """Pure-JAX reference: PyTorch FusionMLP forward with training-mode BatchNorm."""
    n = len(plan)
    h = x
    for li, (layer, (_, _, has_bn)) in enumerate(zip(params, plan)):
        z = h @ layer["w"].T + layer["b"][None, :]
        if has_bn:
            mu = jnp.mean(z, axis=0, keepdims=True)
            var = jnp.mean((z - mu) ** 2, axis=0, keepdims=True)  # biased, as in PyTorch fwd
            z = (z - mu) * jax.lax.rsqrt(var + BN_EPS)
            z = z * layer["gamma"][None, :] + layer["beta"][None, :]
            h = jnp.maximum(z, 0.0)
        elif li == n - 1:
            return z
        else:
            h = jnp.maximum(z, 0.0)
    return h


if __name__ == "__main__":
    INPUT_SIZE, HIDDEN_SIZE, BATCH = 16, 32, 8

    key = jax.random.PRNGKey(0)
    key, kx = jax.random.split(key)
    x = jax.random.normal(kx, (BATCH, INPUT_SIZE), jnp.float32)

    params, plan = init_params(key, INPUT_SIZE, HIDDEN_SIZE)
    w_slab, bn_slab, meta, num_bn = pack_params(params, plan)

    out = jax.block_until_ready(fusion_mlp_pallas(x, w_slab, bn_slab, meta, num_bn))
    ref = fusion_mlp_ref(x, params, plan)

    assert out.shape == (BATCH, 1), out.shape
    # One-pass (clamped) BN variance in-kernel vs two-pass reference: tiny fp delta.
    assert jnp.allclose(out, ref, atol=1e-4, rtol=1e-4), (
        f"mismatch vs JAX reference: max abs err {float(jnp.max(jnp.abs(out - ref)))}"
    )
    print("KERNEL_OK")
</pallas_src>

<mosaic_0001>
module attributes {stable_mosaic.version = 11 : i64} {
  func.func @kernel(%arg0: memref<128x16xf32, #tpu.memory_space<vmem>>, %arg1: memref<64x128xf32, #tpu.memory_space<vmem>>, %arg2: memref<16x4xf32, #tpu.memory_space<vmem>>, %arg3: memref<1x128xf32, #tpu.memory_space<vmem>>) attributes {dimension_semantics = [], scalar_prefetch = 0 : i64, scratch_operands = 0 : i64, tpu.core_type = #tpu.core_type<tc>} {
    %c0 = arith.constant 0 : index
    %c0_0 = arith.constant 0 : index
    %0 = vector.load %arg2[%c0, %c0_0] : memref<16x4xf32, #tpu.memory_space<vmem>>, vector<16x4xf32>
    %c0_1 = arith.constant 0 : index
    %c0_2 = arith.constant 0 : index
    %1 = vector.load %arg0[%c0_1, %c0_2] : memref<128x16xf32, #tpu.memory_space<vmem>>, vector<128x16xf32>
    %2 = tpu.transpose %1, [1, 0] : vector<128x16xf32> -> vector<16x128xf32>
    %3 = tpu.iota {dimensions = array<i32: 0>} : vector<128x1xi32>
    %c8_i32 = arith.constant 8 : i32
    %4 = vector.broadcast %c8_i32 : i32 to vector<128x1xi32>
    %5 = arith.cmpi slt, %3, %4 : vector<128x1xi32>
    %6 = arith.extui %5 : vector<128x1xi1> to vector<128x1xi32>
    %7 = arith.sitofp %6 : vector<128x1xi32> to vector<128x1xf32>
    %c0_3 = arith.constant 0 : index
    %c0_4 = arith.constant 0 : index
    %8 = vector.load %arg1[%c0_3, %c0_4] : memref<64x128xf32, #tpu.memory_space<vmem>>, vector<32x16xf32>
    %cst = arith.constant dense<0.000000e+00> : vector<32x128xf32>
    %9 = tpu.matmul %8, %2, %cst {dimension_numbers = #tpu.dot_dimension_numbers<[1], [0], [0], [1], [0, 0, 1, 1], [], []>} : vector<32x16xf32>, vector<16x128xf32>, vector<32x128xf32> -> vector<32x128xf32>
    %c0_5 = arith.constant 0 : index
    %c16 = arith.constant 16 : index
    %10 = vector.load %arg1[%c0_5, %c16] : memref<64x128xf32, #tpu.memory_space<vmem>>, vector<32x1xf32>
    %11 = vector.broadcast %10 : vector<32x1xf32> to vector<32x128xf32>
    %12 = arith.addf %9, %11 : vector<32x128xf32>
    %cst_6 = arith.constant 0.000000e+00 : f32
    %13 = vector.broadcast %cst_6 : f32 to vector<32x128xf32>
    %14 = arith.maximumf %12, %13 : vector<32x128xf32>
    %c32 = arith.constant 32 : index
    %c0_7 = arith.constant 0 : index
    %15 = vector.load %arg1[%c32, %c0_7] : memref<64x128xf32, #tpu.memory_space<vmem>>, vector<16x32xf32>
    %cst_8 = arith.constant dense<0.000000e+00> : vector<16x128xf32>
    %16 = tpu.matmul %15, %14, %cst_8 {dimension_numbers = #tpu.dot_dimension_numbers<[1], [0], [0], [1], [0, 0, 1, 1], [], []>} : vector<16x32xf32>, vector<32x128xf32>, vector<16x128xf32> -> vector<16x128xf32>
    %17 = arith.mulf %16, %16 : vector<16x128xf32>
    %18 = tpu.concatenate %16, %17 in 0 : vector<16x128xf32>, vector<16x128xf32> -> vector<32x128xf32>
    %cst_9 = arith.constant dense<0.000000e+00> : vector<32x1xf32>
    %19 = tpu.matmul %18, %7, %cst_9 {dimension_numbers = #tpu.dot_dimension_numbers<[1], [0], [0], [1], [0, 0, 1, 1], [], []>} : vector<32x128xf32>, vector<128x1xf32>, vector<32x1xf32> -> vector<32x1xf32>
    %20 = vector.extract_strided_slice %19 {offsets = [0, 0], sizes = [16, 1], strides = [1, 1]} : vector<32x1xf32> to vector<16x1xf32>
    %cst_10 = arith.constant 1.250000e-01 : f32
    %21 = vector.broadcast %cst_10 : f32 to vector<16x1xf32>
    %22 = arith.mulf %20, %21 : vector<16x1xf32>
    %23 = vector.extract_strided_slice %19 {offsets = [16, 0], sizes = [16, 1], strides = [1, 1]} : vector<32x1xf32> to vector<16x1xf32>
    %cst_11 = arith.constant 1.250000e-01 : f32
    %24 = vector.broadcast %cst_11 : f32 to vector<16x1xf32>
    %25 = arith.mulf %23, %24 : vector<16x1xf32>
    %26 = arith.mulf %22, %22 : vector<16x1xf32>
    %27 = arith.subf %25, %26 : vector<16x1xf32>
    %cst_12 = arith.constant 0.000000e+00 : f32
    %28 = vector.broadcast %cst_12 : f32 to vector<16x1xf32>
    %29 = arith.maximumf %27, %28 : vector<16x1xf32>
    %30 = vector.extract_strided_slice %0 {offsets = [0, 0], sizes = [16, 2], strides = [1, 1]} : vector<16x4xf32> to vector<16x2xf32>
    %31 = vector.extract_strided_slice %30 {offsets = [0, 0], sizes = [16, 1], strides = [1, 1]} : vector<16x2xf32> to vector<16x1xf32>
    %cst_13 = arith.constant 9.99999974E-6 : f32
    %32 = vector.broadcast %cst_13 : f32 to vector<16x1xf32>
    %33 = arith.addf %29, %32 : vector<16x1xf32>
    %34 = math.rsqrt %33 : vector<16x1xf32>
    %35 = arith.mulf %31, %34 : vector<16x1xf32>
    %36 = vector.extract_strided_slice %30 {offsets = [0, 1], sizes = [16, 1], strides = [1, 1]} : vector<16x2xf32> to vector<16x1xf32>
    %37 = arith.mulf %22, %35 : vector<16x1xf32>
    %38 = arith.subf %36, %37 : vector<16x1xf32>
    %39 = vector.broadcast %35 : vector<16x1xf32> to vector<16x128xf32>
    %40 = arith.mulf %16, %39 : vector<16x128xf32>
    %41 = vector.broadcast %38 : vector<16x1xf32> to vector<16x128xf32>
    %42 = arith.addf %40, %41 : vector<16x128xf32>
    %cst_14 = arith.constant 0.000000e+00 : f32
    %43 = vector.broadcast %cst_14 : f32 to vector<16x128xf32>
    %44 = arith.maximumf %42, %43 : vector<16x128xf32>
    %c48 = arith.constant 48 : index
    %c0_15 = arith.constant 0 : index
    %45 = vector.load %arg1[%c48, %c0_15] : memref<64x128xf32, #tpu.memory_space<vmem>>, vector<8x16xf32>
    %cst_16 = arith.constant dense<0.000000e+00> : vector<8x128xf32>
    %46 = tpu.matmul %45, %44, %cst_16 {dimension_numbers = #tpu.dot_dimension_numbers<[1], [0], [0], [1], [0, 0, 1, 1], [], []>} : vector<8x16xf32>, vector<16x128xf32>, vector<8x128xf32> -> vector<8x128xf32>
    %47 = arith.mulf %46, %46 : vector<8x128xf32>
    %48 = tpu.concatenate %46, %47 in 0 : vector<8x128xf32>, vector<8x128xf32> -> vector<16x128xf32>
    %cst_17 = arith.constant dense<0.000000e+00> : vector<16x1xf32>
    %49 = tpu.matmul %48, %7, %cst_17 {dimension_numbers = #tpu.dot_dimension_numbers<[1], [0], [0], [1], [0, 0, 1, 1], [], []>} : vector<16x128xf32>, vector<128x1xf32>, vector<16x1xf32> -> vector<16x1xf32>
    %50 = vector.extract_strided_slice %49 {offsets = [0, 0], sizes = [8, 1], strides = [1, 1]} : vector<16x1xf32> to vector<8x1xf32>
    %cst_18 = arith.constant 1.250000e-01 : f32
    %51 = vector.broadcast %cst_18 : f32 to vector<8x1xf32>
    %52 = arith.mulf %50, %51 : vector<8x1xf32>
    %53 = vector.extract_strided_slice %49 {offsets = [8, 0], sizes = [8, 1], strides = [1, 1]} : vector<16x1xf32> to vector<8x1xf32>
    %cst_19 = arith.constant 1.250000e-01 : f32
    %54 = vector.broadcast %cst_19 : f32 to vector<8x1xf32>
    %55 = arith.mulf %53, %54 : vector<8x1xf32>
    %56 = arith.mulf %52, %52 : vector<8x1xf32>
    %57 = arith.subf %55, %56 : vector<8x1xf32>
    %cst_20 = arith.constant 0.000000e+00 : f32
    %58 = vector.broadcast %cst_20 : f32 to vector<8x1xf32>
    %59 = arith.maximumf %57, %58 : vector<8x1xf32>
    %60 = vector.extract_strided_slice %0 {offsets = [0, 2], sizes = [8, 2], strides = [1, 1]} : vector<16x4xf32> to vector<8x2xf32>
    %61 = vector.extract_strided_slice %60 {offsets = [0, 0], sizes = [8, 1], strides = [1, 1]} : vector<8x2xf32> to vector<8x1xf32>
    %cst_21 = arith.constant 9.99999974E-6 : f32
    %62 = vector.broadcast %cst_21 : f32 to vector<8x1xf32>
    %63 = arith.addf %59, %62 : vector<8x1xf32>
    %64 = math.rsqrt %63 : vector<8x1xf32>
    %65 = arith.mulf %61, %64 : vector<8x1xf32>
    %66 = vector.extract_strided_slice %60 {offsets = [0, 1], sizes = [8, 1], strides = [1, 1]} : vector<8x2xf32> to vector<8x1xf32>
    %67 = arith.mulf %52, %65 : vector<8x1xf32>
    %68 = arith.subf %66, %67 : vector<8x1xf32>
    %69 = vector.broadcast %65 : vector<8x1xf32> to vector<8x128xf32>
    %70 = arith.mulf %46, %69 : vector<8x128xf32>
    %71 = vector.broadcast %68 : vector<8x1xf32> to vector<8x128xf32>
    %72 = arith.addf %70, %71 : vector<8x128xf32>
    %cst_22 = arith.constant 0.000000e+00 : f32
    %73 = vector.broadcast %cst_22 : f32 to vector<8x128xf32>
    %74 = arith.maximumf %72, %73 : vector<8x128xf32>
    %c56 = arith.constant 56 : index
    %c0_23 = arith.constant 0 : index
    %75 = vector.load %arg1[%c56, %c0_23] : memref<64x128xf32, #tpu.memory_space<vmem>>, vector<1x8xf32>
    %cst_24 = arith.constant dense<0.000000e+00> : vector<1x128xf32>
    %76 = tpu.matmul %75, %74, %cst_24 {dimension_numbers = #tpu.dot_dimension_numbers<[1], [0], [0], [1], [0, 0, 1, 1], [], []>} : vector<1x8xf32>, vector<8x128xf32>, vector<1x128xf32> -> vector<1x128xf32>
    %c56_25 = arith.constant 56 : index
    %c8 = arith.constant 8 : index
    %77 = vector.load %arg1[%c56_25, %c8] : memref<64x128xf32, #tpu.memory_space<vmem>>, vector<1x1xf32>
    %78 = vector.broadcast %77 : vector<1x1xf32> to vector<1x128xf32>
    %79 = arith.addf %76, %78 : vector<1x128xf32>
    %c0_26 = arith.constant 0 : index
    %c0_27 = arith.constant 0 : index
    %80 = vector.load %arg3[%c0_26, %c0_27] : memref<1x128xf32, #tpu.memory_space<vmem>>, vector<1x128xf32>
    tpu.vector_store %arg3[%c0_26, %c0_27], %79 {strides = array<i32>} : memref<1x128xf32, #tpu.memory_space<vmem>>, vector<1x128xf32>,
    return
  }
}

</mosaic_0001>

<bundles_post_ra>
// kernel: tpu_custom_call.1
= control target key start
LH: loop header
LB: loop body
LE: loop exit
PB: predicated region body
PF: predicated region fallthrough
CT: control target
= control target key end

     0   :  { %vm122_vm0 = vcmask 130048   ;;  %v1022_v6 = vmov 16   ;;  %s1204_s0 = inlined_call_operand.vmem [shape: f32[128,16], index: 0, kind: input, shape index: {}]   ;;  %s1205_s1 = inlined_call_operand.vmem [shape: f32[64,128], index: 1, kind: input, shape index: {}]   ;;  %s1206_s2 = inlined_call_operand.vmem [shape: f32[16,4], index: 2, kind: input, shape index: {}]   ;;  %s1207_s3 = inlined_call_operand.hbm [shape: f32[1,128], index: 3, kind: output, shape index: {}]  }
   0x1   :  { %v17_v0 = vld [vmem:[%s1204_s0] sm:$0xff]  ;;  %v18_v1 = vld [vmem:[%s1204_s0 + $0x8] sm:$0xff]  ;;  %v19_v2 = vld [vmem:[%s1204_s0 + $0x10] sm:$0xff]  ;;  %982 = vset.pattern.permute.xlu0 %v1022_v6  ;;  %983 = vset.pattern.permute.xlu1 %v1022_v6 }
   0x2   :  { %v908_v3 = vpack.c.bf16 %v18_v1, %v17_v0  ;;  %vm1068_vm1 = vmpackc.low %vm122_vm0, %vm122_vm0  ;;  %v20_v5 = vld [vmem:[%s1204_s0 + $0x18] sm:$0xff]  ;;  %v98_v8 = vld [vmem:[%s1205_s1] sm:$0xff] }
   0x3   :  { %v914_v7 = vpack.c.bf16 %v20_v5, %v19_v2  ;;  %v21_v9 = vld [vmem:[%s1204_s0 + $0x20] sm:$0xff]  ;;  %v22_v10 = vld [vmem:[%s1204_s0 + $0x28] sm:$0xff]  ;;  %866 = vmatprep.mubr.msk.f32.mxu0 %vm122_vm0, %v98_v8  ;;  %v100_v11 = vld [vmem:[%s1205_s1 + $0x10] sm:$0xff]  ;;  %104 = vperm.xlu0 %982, %v98_v8  }
   0x4   :  { %910 = vmatprep.subr.msk.bf16.mxu0 %vm1068_vm1, %v908_v3  ;;  %114 = vperm.xlu1 %983, %v100_v11  }
   0x5   :  { %913 = vmatpush3.bf16.xpose.msk.msra.mxu0 %vm1068_vm1, %v908_v3 }
   0x6   :  { %916 = vmatprep.subr.msk.bf16.mxu0 %vm1068_vm1, %v914_v7 }
   0x7   :  { %8 = vsyncpa [#allocation3], 0  ;;  %v920_v12 = vpack.c.bf16 %v22_v10, %v21_v9  ;;  %v99_v13 = vld [vmem:[%s1205_s1 + $0x8] sm:$0xff]  ;;  %v101_v14 = vld [vmem:[%s1205_s1 + $0x18] sm:$0xff]  ;;  %vm270_vm2 = vcmask 261120   ;;  %v1023_v50 = vmov 1.0  }
   0x8   :  { %109 = vperm.xlu0 %982, %v99_v13   ;;  %119 = vperm.xlu1 %983, %v101_v14   ;;  %v23_v15 = vld [vmem:[%s1204_s0 + $0x30] sm:$0xff]  ;;  %v24_v16 = vld [vmem:[%s1204_s0 + $0x38] sm:$0xff]  ;;  %v25_v18 = vld [vmem:[%s1204_s0 + $0x40] sm:$0xff]  ;;  %v1024_v55 = vmov 0   ;;  %s1025_s5 = smov 1   ;;  %vm1028_vm3 = vmmov 0  }
   0x9   :  { %v926_v17 = vpack.c.bf16 %v24_v16, %v23_v15  ;;  %v26_v19 = vld [vmem:[%s1204_s0 + $0x48] sm:$0xff]  ;;  %v27_v21 = vld [vmem:[%s1204_s0 + $0x50] sm:$0xff]  ;;  %v28_v22 = vld [vmem:[%s1204_s0 + $0x58] sm:$0xff]  ;;  %v1026_v16 = vmov 1   ;;  %s1031_s7 = smov 2   ;;  %s1032_s8 = smov 126  }
   0xa   :  { %v932_v20 = vpack.c.bf16 %v26_v19, %v25_v18  ;;  %v938_v23 = vpack.c.bf16 %v28_v22, %v27_v21  ;;  %v29_v24 = vld [vmem:[%s1204_s0 + $0x60] sm:$0xff]  ;;  %v30_v25 = vld [vmem:[%s1204_s0 + $0x68] sm:$0xff]  ;;  %v31_v27 = vld [vmem:[%s1204_s0 + $0x70] sm:$0xff]  ;;  %v1027_v21 = vmov 0.0|0.0   ;;  %v1029_v22 = vmov 0.0   ;;  %s1034_s9 = smov 3  }
   0xb   :  { %v944_v26 = vpack.c.bf16 %v30_v25, %v29_v24  ;;  %v32_v28 = vld [vmem:[%s1204_s0 + $0x78] sm:$0xff]  ;;  %v268_v30 = vld [vmem:[%s1205_s1 + $0x20] sm:$0xff]  ;;  %v269_v49 = vld [vmem:[%s1205_s1 + $0x28] sm:$0xff]  ;;  %vm683_vm4 = vcmask 64512   ;;  %s1036_s12 = smov [#allocation2]  }
   0xc   :  { %v950_v29 = vpack.c.bf16 %v32_v28, %v31_v27  ;;  %880 = vmatprep.mubr.msk.f32.mxu1 %vm270_vm2, %v268_v30  ;;  %985 = vset.pattern.permute.xlu1 %v1024_v55  ;;  %v16_v8 = vld [vmem:[%s1206_s2 + $0x8] sm:$0xff]  ;;  %v1175_v9 = vld [vmem:[%s1206_s2] sm:$0xff]  ;;  %s763_s13 = sshll.u32 %s1036_s12, 4  ;;  %s764_s13 = int_to_ptr.vmem [resolvable:$true] %s763_s13 }
   0xd   :  { %919 = vmatpush3.bf16.xpose.msk.msra.mxu0 %vm1068_vm1, %v914_v7  ;;  %984 = vset.pattern.permute.xlu0 %v1024_v55  ;;  %v677_v55 = vld [vmem:[%s1205_s1 + $0x38] sm:$0x1]  ;;  %s1002_s14 = scalar_lea.vmem %s764_s13, 32  ;;  %p1003_p1 = scmp.lt.s32.totalorder %s764_s13, %s764_s13 }
   0xe   :  { %922 = vmatprep.subr.msk.bf16.mxu0 %vm1068_vm1, %v920_v12 }
  0x15   :  { %925 = vmatpush3.bf16.xpose.msk.msra.mxu0 %vm1068_vm1, %v920_v12 }
  0x16   :  { %928 = vmatprep.subr.msk.bf16.mxu0 %vm1068_vm1, %v926_v17 }
  0x1d   :  { %931 = vmatpush3.bf16.xpose.msk.msra.mxu0 %vm1068_vm1, %v926_v17 }
  0x1e   :  { %934 = vmatprep.subr.msk.bf16.mxu0 %vm1068_vm1, %v932_v20 }
  0x25   :  { %937 = vmatpush3.bf16.xpose.msk.msra.mxu0 %vm1068_vm1, %v932_v20 }
  0x26   :  { %940 = vmatprep.subr.msk.bf16.mxu0 %vm1068_vm1, %v938_v23 }
  0x2d   :  { %943 = vmatpush3.bf16.xpose.msk.msra.mxu0 %vm1068_vm1, %v938_v23 }
  0x2e   :  { %946 = vmatprep.subr.msk.bf16.mxu0 %vm1068_vm1, %v944_v26 }
  0x35   :  { %949 = vmatpush3.bf16.xpose.msk.msra.mxu0 %vm1068_vm1, %v944_v26 }
  0x36   :  { %952 = vmatprep.subr.msk.bf16.mxu0 %vm1068_vm1, %v950_v29 }
  0x3d   :  { %955 = vmatpush3.bf16.xpose.msk.msra.mxu0 %vm1068_vm1, %v950_v29 }
  0x44   :  { %867 = vmatmul.mubr.msk.f32.vlgmr.msra.gmra.mrb[0].mxu0 %vm122_vm0, %v99_v13 }
  0x45   :  { %869 = vmatprep.mubr.msk.f32.mxu0 %vm122_vm0, %v100_v11 }
  0x48   :  { %870 = vmatmul.mubr.msk.f32.gmra.mrb[2].mxu0 %vm122_vm0, %v101_v14 }
  0x82   :  { %v105_v31 = vpop.permute.xlu0 %104 }
  0x83   :  { %v115_v32 = vpop.permute.xlu1 %114 }
  0x87   :  { %v110_v33 = vpop.permute.xlu0 %109  ;;  %v120_v39 = vpop.permute.xlu1 %119 }
 0x117   :  { %v868_v34 = vpop.f32.mrb[0].mxu0 }
 0x118   :  { %v251_v35 = vadd.f32 %v868_v34, %v110_v33  ;;  %v245_v36 = vpop.f32.mrb[1].mxu0  ;;  %v493_v34 = vld [vmem:[%s1205_s1 + $0x30] sm:$0xff]  ;;  %s998_s1 = scalar_lea.vmem %s764_s13, 16 }
 0x119   :  { %v246_v37 = vadd.f32 %v245_v36, %v105_v31  ;;  %p999_p0 = scmp.ne.s32.totalorder %s764_s13, %s998_s1  ;;  %p1004_p2 = scmp.lt.s32.totalorder %s1002_s14, %s998_s1 }
 0x11a   :  { %v265_v38 = vmax.f32 %v251_v35, 0.0 }
 0x11b   :  { %v264_v40 = vmax.f32 %v246_v37, 0.0  ;;  %v871_v41 = vpop.f32.mrb[2].mxu0  ;;  %p1005_p3 = por %p1004_p2, %p1003_p1 }
 0x11c   :  { %v261_v42 = vadd.f32 %v871_v41, %v120_v39  ;;  %v255_v43 = vpop.f32.mrb[3].mxu0 }
 0x11d   :  { %v256_v44 = vadd.f32 %v255_v43, %v115_v32  ;;  %v956_v45 = vpack.c.bf16 %v265_v38, %v264_v40  ;;  %p1006_p4 = pnand %p1005_p3, %p999_p0 }
 0x11e   :  { %v267_v46 = vmax.f32 %v261_v42, 0.0 }
 0x11f   :  { %v266_v47 = vmax.f32 %v256_v44, 0.0  ;;  %957 = vmatprep.subr.bf16.mxu1 %v956_v45 }
 0x120   :  { %959 = vmatpush3.bf16.msra.mxu1 %v956_v45 }
 0x121   :  { %v960_v48 = vpack.c.bf16 %v267_v46, %v266_v47  ;;  %v1030_v46 = vmov 2  }
 0x123   :  { %961 = vmatprep.subr.bf16.mxu1 %v960_v48 }
 0x124   :  { %963 = vmatpush3.bf16.msra.mxu1 %v960_v48 }
 0x125   :  { %883 = vmatprep.subr.mxu1 %v1023_v50 }
 0x127   :  { %881 = vmatmul.mubr.msk.f32.vlgmr.msra.gmra.mrb[0].mxu1 %vm270_vm2, %v269_v49 }
 0x128   :  { %884 = vmatpush3.msra.mxu1 %v1023_v50 }
 0x129   :  { %964 = vmatprep.subr.bf16.mxu1 %v1027_v21 }
 0x1fa   :  { %v882_v51 = vpop.f32.mrb[0].mxu1 }
 0x1fb   :  { %v343_v52 = vpop.f32.mrb[1].mxu1  ;;  %v353_v54 = vmul.f32 %v882_v51, %v882_v51 }
 0x1fc   :  { %v352_v53 = vmul.f32 %v343_v52, %v343_v52  ;;  %885 = vmatprep.mubr.f32.mxu1 %v343_v52 }
 0x1fd   :  { %886 = vmatmul.mubr.f32.vlgmr.msra.gmra.mrb[2].mxu1 %v882_v51 }
 0x1fe   :  { %888 = vmatprep.mubr.f32.mxu1 %v352_v53 }
 0x201   :  { %889 = vmatmul.mubr.f32.gmra.mrb[4].mxu1 %v353_v54 }
 0x202   :  { %895 = vmatprep.mubr.msk.f32.mxu1 %vm1028_vm3, %v1029_v22 }
 0x2d0   :  { %v887_v56 = vpop.f32.mrb[2].mxu1 }
 0x2d1   :  { %v440_v57 = vmul.f32 0.125, %v887_v56  ;;  %v420_v58 = vpop.f32.mrb[3].mxu1  ;;  %v1035_v56 = vmov 8  }
 0x2d2   :  { %v439_v59 = vmul.f32 0.125, %v420_v58 }
 0x2d3   :  { %v444_v61 = vmul.f32 %v440_v57, %v440_v57 }
 0x2d4   :  { %v890_v60 = vpop.f32.mrb[4].mxu1  ;;  %v443_v0 = vmul.f32 %v439_v59, %v439_v59 }
 0x2d5   :  { %v442_v62 = vmul.f32 0.125, %v890_v60  ;;  %v430_v63 = vpop.f32.mrb[5].mxu1 }
 0x2d6   :  { %v441_v1 = vmul.f32 0.125, %v430_v63 }
 0x2d7   :  { %v446_v2 = vsub.f32 %v442_v62, %v444_v61 }
 0x2d8   :  { %v445_v3 = vsub.f32 %v441_v1, %v443_v0 }
 0x2d9   :  { %v448_v4 = vmax.f32 %v446_v2, 0.0 }
 0x2da   :  { %v447_v5 = vmax.f32 %v445_v3, 0.0 }
 0x2db   :  { %v450_v6 = vadd.f32 1e-05, %v448_v4 }
 0x2dc   :  { %v449_v7 = vadd.f32 1e-05, %v447_v5 }
 0x2dd   :  { %992 = vrsqrt.f32 %v450_v6 }
 0x2de   :  { %994 = vrsqrt.f32 %v449_v7 }
 0x2e7   :  { %v993_v10 = vpop.eup %992 }
 0x2e8   :  { %v995_v11 = vpop.eup %994  ;;  %v454_v12 = vmul.f32 %v993_v10, %v16_v8 }
 0x2e9   :  { %v453_v13 = vmul.f32 %v995_v11, %v1175_v9 }
 0x2ea   :  { %v456_v14 = vmul.f32 %v454_v12, %v440_v57 }
 0x2eb   :  { %v455_v15 = vmul.f32 %v453_v13, %v439_v59 }
 0x2ec   :  { %461 = vrot.lane.b32.xlu1 %v456_v14, %s1025_s5 }
 0x2ed   :  { %459 = vrot.lane.b32.xlu0 %v455_v15, %s1025_s5 }
 0x2f0   :  { %474 = vperm.xlu1 %985, %v454_v12  }
 0x2f1   :  { %469 = vperm.xlu0 %984, %v453_v13  }
 0x2f4   :  { %986 = vset.pattern.permute.xlu1 %v1026_v16 }
 0x2f5   :  { %987 = vset.pattern.permute.xlu0 %v1026_v16 }
 0x35e   :  { %v462_v17 = vpop.permute.xlu1 %461 }
 0x35f   :  { %v466_v18 = vsub.f32 %v16_v8, %v462_v17  ;;  %v460_v19 = vpop.permute.xlu0 %459 }
 0x360   :  { %v465_v20 = vsub.f32 %v1175_v9, %v460_v19 }
 0x361   :  { %486 = vperm.xlu0 %987, %v466_v18  }
 0x362   :  { %481 = vperm.xlu1 %986, %v465_v20  }
 0x366   :  { %988 = vset.pattern.permute.xlu1 %v1030_v46 }
 0x36f   :  { %v475_v23 = vpop.permute.xlu1 %474 }
 0x370   :  { %v470_v24 = vpop.permute.xlu0 %469  ;;  %v478_v25 = vmul.f32 %v882_v51, %v475_v23 }
 0x371   :  { %v477_v26 = vmul.f32 %v470_v24, %v343_v52 }
 0x3e0   :  { %v487_v27 = vpop.permute.xlu0 %486 }
 0x3e1   :  { %v490_v28 = vadd.f32 %v487_v27, %v478_v25  ;;  %v482_v29 = vpop.permute.xlu1 %481 }
 0x3e2   :  { %v489_v30 = vadd.f32 %v482_v29, %v477_v26 }
 0x3e3   :  { %v492_v31 = vmax.f32 %v490_v28, 0.0 }
 0x3e4   :  { %v491_v32 = vmax.f32 %v489_v30, 0.0 }
 0x3e6   :  { %v965_v33 = vpack.c.bf16 %v492_v31, %v491_v32 }
 0x3e8   :  { %966 = vmatpush3.bf16.msra.mxu1 %v965_v33 }
 0x3e9   :  { %898 = vmatprep.subr.mxu1 %v1023_v50 }
 0x3eb   :  { %896 = vmatmul.mubr.msk.f32.vlgmr.msra.gmra.mrb[6].mxu1 %vm122_vm0, %v493_v34 }
 0x3ec   :  { %899 = vmatpush3.msra.mxu1 %v1023_v50  ;;  %v1033_v50 = vmov 3  }
 0x3ed   :  { %903 = vmatprep.subr.mxu1 %v1029_v22  ;;  %989 = vset.pattern.permute.xlu0 %v1033_v50 }
 0x4be   :  { %v563_v35 = vpop.f32.mrb[6].mxu1 }
 0x4bf   :  { %v567_v36 = vmul.f32 %v563_v35, %v563_v35  ;;  %v897_v37 = vpop.f32.mrb[7].mxu1  ;;  %900 = vmatprep.mubr.f32.mxu1 %v563_v35 }
 0x4c1   :  { %901 = vmatmul.mubr.f32.vlgmr.msra.gmra.mrb[8].mxu1 %v567_v36 }
 0x4c2   :  { %905 = vmatprep.mubr.msk.f32.mxu1 %vm1028_vm3, %v1029_v22 }
 0x594   :  { %v902_v38 = vpop.f32.mrb[8].mxu1 }
 0x595   :  { %v634_v39 = vpop.f32.mrb[9].mxu1  ;;  %v644_v41 = vmul.f32 0.125, %v902_v38 }
 0x596   :  { %v643_v40 = vmul.f32 0.125, %v634_v39 }
 0x598   :  { %v645_v42 = vmul.f32 %v643_v40, %v643_v40 }
 0x59a   :  { %v646_v43 = vsub.f32 %v644_v41, %v645_v42 }
 0x59c   :  { %v647_v44 = vmax.f32 %v646_v43, 0.0 }
 0x59e   :  { %v648_v45 = vadd.f32 1e-05, %v647_v44 }
 0x5a0   :  { %996 = vrsqrt.f32 %v648_v45 }
 0x5aa   :  { %v997_v47 = vpop.eup %996 }
 0x5ab   :  { %651 = vrot.lane.b32.xlu1 %v997_v47, %s1031_s7 }
 0x61d   :  { %v652_v48 = vpop.permute.xlu1 %651 }
 0x61e   :  { %v654_v49 = vmul.f32 %v652_v48, %v1175_v9 }
 0x620   :  { %656 = vrot.lane.b32.xlu1 %v654_v49, %s1032_s8 }
 0x624   :  { %666 = vperm.xlu1 %988, %v654_v49  }
 0x628   :  { %990 = vset.pattern.permute.xlu1 %v1035_v56 }
 0x629   :  { %680 = vperm.xlu1 %990, %v677_v55  }
 0x692   :  { %v657_v51 = vpop.permute.xlu1 %656 }
 0x693   :  { %v659_v52 = vmul.f32 %v657_v51, %v643_v40 }
 0x695   :  { %661 = vrot.lane.b32.xlu0 %v659_v52, %s1034_s9 }
 0x6a3   :  { %v667_v57 = vpop.permute.xlu1 %666 }
 0x6a4   :  { %v669_v58 = vmul.f32 %v667_v57, %v563_v35 }
 0x6a8   :  { %v681_v62 = vpop.permute.xlu1 %680 }
 0x707   :  { %v662_v53 = vpop.permute.xlu0 %661 }
 0x708   :  { %v664_v54 = vsub.f32 %v1175_v9, %v662_v53 }
 0x70a   :  { %672 = vperm.xlu0 %989, %v664_v54  }
 0x70e   :  { %991 = vset.pattern.permute.xlu0 %v1035_v56 }
 0x789   :  { %v673_v59 = vpop.permute.xlu0 %672 }
 0x78a   :  { %v675_v60 = vadd.f32 %v673_v59, %v669_v58 }
 0x78c   :  { %v676_v61 = vmax.f32 %v675_v60, 0.0 }
 0x78e   :  { %904 = vmatpush3.msra.mxu1 %v676_v61 }
 0x78f   :  { %906 = vmatmul.mubr.msk.f32.vlgmr.msra.gmra.mrb[10].mxu1 %vm683_vm4, %v677_v55 }
 0x862   :  { %v752_v63 = vpop.f32.mrb[10].mxu1 }
 0x863   :  { %v907_v0 = vpop.f32.mrb[11].mxu1  ;;  %v753_v1 = vadd.f32 %v752_v63, %v681_v62 }
 0x865   :  { %756 = vst [vmem:[#allocation2] sm:$0x1] %v753_v1 }
 0x866   :  { %1009 = shalt.err (!%p1006_p4)
}
 0x867   :  { %s1010_s17 = scalar_lea.hbm %s1207_s3, 16 }
 0x868   :  { %p1011_p5 = scmp.ne.s32.totalorder %s1207_s3, %s1010_s17  ;;  %p1014_p6 = scmp.lt.u32.totalorder %s1010_s17, %s1207_s3 }
 0x86a   :  { %p1016_p7 = pnand %p1014_p6, %p1011_p5 }
 0x86c   :  { %1019 = shalt.err (!%p1016_p7)
}
 0x86d   :  { %766 = dma.vmem_to_hbm [thread:$0]  %s764_s13, 16, %s1207_s3, [#allocation3]  }
 0x86e   :  { %1020 = dma.done.wait [#allocation3], 16  }
 0x86f   :  { %1021 = vsyncadd [#allocation3], 4294967280 }
 0x870   :  { %770 = vsyncpa [#allocation3], 1 }

</bundles_post_ra>
